<compile_context>
chip_gen: v7x
topology: tpu7x:2x2x1
jax: 0.10.0
libtpu: 0.0.40
codegen_flags: <defaults>
</compile_context>

<pallas_src>
import functools

import jax
import jax.numpy as jnp
from jax import lax
from jax.experimental import pallas as pl
from jax.experimental.pallas import tpu as pltpu

_EPS = 1e-5
_MAX_BLOCK_BYTES = 8 << 20   # 4-8 MiB blocks reach the measured ~85-90% HBM roofline
_LANE = 128


def _usable_vmem_bytes() -> int:
    """~75% of physical VMEM (v5e/v6e: 128 MiB, v7x: 64 MiB); v7x-safe fallback."""
    cap = 64 << 20
    try:
        info = pltpu.get_tpu_info()
        cap = int(getattr(info, "vmem_capacity_bytes", cap)) or cap
    except Exception:  # not on TPU / older jax: keep the conservative default
        pass
    return min((cap * 3) // 4, 96 << 20)


def _single_pass_block(cs: int, channel_bytes: int, block_budget: int):
    """K sub-channels per block for the fused kernel, or None if nothing legal fits.

    K must divide C*S and be a multiple of 8 (sublane block rule) unless it equals the
    full extent. Preference order: (a) even number of grid steps (v7x: 2 TensorCores on
    the parallel axis), (b) >= 2 steps, (c) largest fitting K. Never exceeds the budget.
    """
    if cs % 8 == 0:
        candidates = [k for k in range(8, cs + 1, 8) if cs % k == 0]
    else:
        candidates = [cs]                       # only the full extent is legal
    fitting = [k for k in candidates if k * channel_bytes <= block_budget]
    if not fitting:
        return None
    even_steps = [k for k in fitting if cs // k >= 2 and (cs // k) % 2 == 0]
    multi_step = [k for k in fitting if cs // k >= 2]
    if even_steps:
        return max(even_steps)
    if multi_step:
        return max(multi_step)
    return max(fitting)


def _two_pass_blocks(cs: int, n: int, l: int, itemsize: int, block_budget: int):
    """(K, Lb) blocks for the two-kernel fallback (K sub-channels x Lb lanes)."""
    kc = 8 if cs % 8 == 0 else cs
    lb_cands = [d for d in range(_LANE, l + 1, _LANE) if l % d == 0]
    if l not in lb_cands:
        lb_cands.append(l)                      # full extent is always legal
    fitting = [d for d in lb_cands if n * kc * d * itemsize <= block_budget]
    # TODO(synk): if even the smallest legal L chunk exceeds the budget (huge N), add a
    # batch-chunk grid axis as well instead of taking the smallest legal chunk.
    lb = max(fitting) if fitting else min(lb_cands)
    return kc, lb


def _ssn_fused_kernel(x_ref, gamma_ref, beta_ref, o_ref):
    # x_ref/o_ref: (N, K, Fs*T) VMEM blocks; gamma_ref/beta_ref: (1, C*S, 1) resident.
    i = pl.program_id(0)
    n, k, l = x_ref.shape
    inv_count = 1.0 / float(n * l)

    # Re-read x_ref per phase instead of keeping one block-sized f32 binding alive for
    # the whole kernel (VMEM re-reads are cheap; avoids spill / upcast temporaries).
    mean = jnp.sum(x_ref[...].astype(jnp.float32), axis=(0, 2), keepdims=True) * inv_count
    xc = x_ref[...].astype(jnp.float32) - mean
    var = jnp.sum(xc * xc, axis=(0, 2), keepdims=True) * inv_count   # biased, BN-train
    inv_std = lax.rsqrt(var + _EPS)

    start = i * k
    if k % 8 == 0:
        start = pl.multiple_of(start, 8)
    gamma = gamma_ref[:, pl.ds(start, k), :]    # (1, K, 1), sliced from resident block
    beta = beta_ref[:, pl.ds(start, k), :]
    scale = gamma * inv_std                     # (1, K, 1)
    shift = beta - mean * scale                 # (1, K, 1)
    o_ref[...] = (x_ref[...].astype(jnp.float32) * scale + shift).astype(o_ref.dtype)


def _ssn_stats_kernel(x_ref, gamma_ref, beta_ref, scale_ref, shift_ref,
                      s1_ref, s2_ref, *, inv_count):
    # Grid: (channel blocks, L chunks); the L-chunk axis is the reduction ("arbitrary").
    j = pl.program_id(1)

    @pl.when(j == 0)
    def _():
        s1_ref[...] = jnp.zeros_like(s1_ref)
        s2_ref[...] = jnp.zeros_like(s2_ref)

    xf = x_ref[...].astype(jnp.float32)
    s1_ref[...] += jnp.sum(xf, axis=(0, 2), keepdims=True)
    s2_ref[...] += jnp.sum(xf * xf, axis=(0, 2), keepdims=True)

    @pl.when(j == pl.num_programs(1) - 1)
    def _():
        mean = s1_ref[...] * inv_count
        # Single-pass E[x^2]-mean^2 with f32 accumulation (avoids a 3rd HBM sweep).
        var = jnp.maximum(s2_ref[...] * inv_count - mean * mean, 0.0)
        inv_std = lax.rsqrt(var + _EPS)
        scale = gamma_ref[...] * inv_std
        scale_ref[...] = scale
        shift_ref[...] = beta_ref[...] - mean * scale


def _ssn_apply_kernel(x_ref, scale_ref, shift_ref, o_ref):
    o_ref[...] = (x_ref[...].astype(jnp.float32) * scale_ref[...]
                  + shift_ref[...]).astype(o_ref.dtype)


@functools.partial(jax.jit, static_argnames=("sub_bands", "block_budget_bytes"))
def sub_spectral_norm(x, gamma, beta, *, sub_bands: int, block_budget_bytes=None):
    """x: (N, C, F, T). gamma/beta: (C*sub_bands,). Training-mode BN forward output."""
    n, c, f, t = x.shape
    assert f % sub_bands == 0, "F must be divisible by sub_bands"
    fs = f // sub_bands
    cs = c * sub_bands
    l = fs * t
    itemsize = x.dtype.itemsize

    # Free (contiguous) reshapes only — no transposes: (N,C,F,T) -> (N, C*S, Fs*T).
    xr = x.reshape(n, cs, l)
    g = gamma.astype(jnp.float32).reshape(1, cs, 1)
    b = beta.astype(jnp.float32).reshape(1, cs, 1)

    usable_vmem = _usable_vmem_bytes()
    if block_budget_bytes is None:
        # Residency: 2x in + 2x out blocks (double-buffered) + ~2 block-sized f32
        # temporaries inside the kernel; cap at 8 MiB/block (HBM-roofline plateau).
        factor = 4 + 2 * max(1, 4 // itemsize)
        block_budget = min(_MAX_BLOCK_BYTES, usable_vmem // factor)
    else:
        block_budget = int(block_budget_bytes)

    def _vmem_limit(block_elems: int) -> int:
        need = (4 * block_elems * itemsize            # 2x in + 2x out block buffers
                + 2 * block_elems * 4                 # in-kernel f32 temporaries
                + 4 * ((cs + 7) // 8) * 8 * _LANE * 4 # resident/tiled gamma,beta,stats
                + (2 << 20))                          # headroom
        return max(16 << 20, min(need, usable_vmem))

    channel_bytes = n * l * itemsize
    k = _single_pass_block(cs, channel_bytes, block_budget)

    if k is not None:
        # Fused single-pass path: exactly one HBM read + one HBM write of x.
        out = pl.pallas_call(
            _ssn_fused_kernel,
            out_shape=jax.ShapeDtypeStruct(xr.shape, x.dtype),
            grid_spec=pltpu.PrefetchScalarGridSpec(
                num_scalar_prefetch=0,
                grid=(cs // k,),
                in_specs=[
                    pl.BlockSpec((n, k, l), lambda i: (0, i, 0)),    # x slab
                    pl.BlockSpec((1, cs, 1), lambda i: (0, 0, 0)),   # gamma (resident)
                    pl.BlockSpec((1, cs, 1), lambda i: (0, 0, 0)),   # beta  (resident)
                ],
                out_specs=pl.BlockSpec((n, k, l), lambda i: (0, i, 0)),
            ),
            compiler_params=pltpu.CompilerParams(
                dimension_semantics=("parallel",),
                vmem_limit_bytes=_vmem_limit(n * k * l)),
        )(xr, g, b)
        return out.reshape(n, c, f, t)

    # Fallback: per-sub-channel reduction domain does not fit VMEM -> two kernels
    # (stats with an "arbitrary" L-chunk reduction axis, then elementwise normalize).
    kc, lb = _two_pass_blocks(cs, n, l, itemsize, block_budget)
    n_chunks = l // lb
    stats_kernel = functools.partial(_ssn_stats_kernel, inv_count=1.0 / float(n * l))
    limit = _vmem_limit(n * kc * lb)

    scale, shift = pl.pallas_call(
        stats_kernel,
        out_shape=(jax.ShapeDtypeStruct((1, cs, 1), jnp.float32),
                   jax.ShapeDtypeStruct((1, cs, 1), jnp.float32)),
        grid_spec=pltpu.PrefetchScalarGridSpec(
            num_scalar_prefetch=0,
            grid=(cs // kc, n_chunks),
            in_specs=[
                pl.BlockSpec((n, kc, lb), lambda i, j: (0, i, j)),   # x slab
                pl.BlockSpec((1, kc, 1), lambda i, j: (0, i, 0)),    # gamma
                pl.BlockSpec((1, kc, 1), lambda i, j: (0, i, 0)),    # beta
            ],
            out_specs=[
                pl.BlockSpec((1, kc, 1), lambda i, j: (0, i, 0)),    # scale
                pl.BlockSpec((1, kc, 1), lambda i, j: (0, i, 0)),    # shift
            ],
            scratch_shapes=[pltpu.VMEM((1, kc, 1), jnp.float32),
                            pltpu.VMEM((1, kc, 1), jnp.float32)],
        ),
        compiler_params=pltpu.CompilerParams(
            dimension_semantics=("parallel", "arbitrary"), vmem_limit_bytes=limit),
    )(xr, g, b)

    out = pl.pallas_call(
        _ssn_apply_kernel,
        out_shape=jax.ShapeDtypeStruct(xr.shape, x.dtype),
        grid_spec=pltpu.PrefetchScalarGridSpec(
            num_scalar_prefetch=0,
            grid=(cs // kc, n_chunks),
            in_specs=[
                pl.BlockSpec((n, kc, lb), lambda i, j: (0, i, j)),
                pl.BlockSpec((1, kc, 1), lambda i, j: (0, i, 0)),
                pl.BlockSpec((1, kc, 1), lambda i, j: (0, i, 0)),
            ],
            out_specs=pl.BlockSpec((n, kc, lb), lambda i, j: (0, i, j)),
        ),
        compiler_params=pltpu.CompilerParams(
            dimension_semantics=("parallel", "parallel"), vmem_limit_bytes=limit),
    )(xr, scale, shift)
    return out.reshape(n, c, f, t)


# TODO(synk): PyTorch BatchNorm2d training also updates running_mean/running_var
# (unbiased variance) buffers; only the normalized forward output is produced here.


def _reference(x, gamma, beta, sub_bands):
    n, c, f, t = x.shape
    fs = f // sub_bands
    xr = x.reshape(n, c * sub_bands, fs, t).astype(jnp.float32)
    mean = xr.mean(axis=(0, 2, 3), keepdims=True)
    var = ((xr - mean) ** 2).mean(axis=(0, 2, 3), keepdims=True)
    y = (xr - mean) / jnp.sqrt(var + _EPS)
    y = y * gamma[None, :, None, None] + beta[None, :, None, None]
    return y.reshape(n, c, f, t).astype(x.dtype)


if __name__ == "__main__":
    key = jax.random.PRNGKey(0)
    k_x, k_g, k_b, k_x2 = jax.random.split(key, 4)

    # Primary config (exercises the fused single-pass path).
    N, C, F, T = 2, 4, 16, 16
    SUB_BANDS = 2
    x = jax.random.normal(k_x, (N, C, F, T), dtype=jnp.float32)
    # PyTorch BatchNorm2d default init is gamma=1, beta=0; use non-trivial values.
    gamma = jax.random.normal(k_g, (C * SUB_BANDS,), dtype=jnp.float32) * 0.1 + 1.0
    beta = jax.random.normal(k_b, (C * SUB_BANDS,), dtype=jnp.float32) * 0.1

    y = sub_spectral_norm(x, gamma, beta, sub_bands=SUB_BANDS)
    y = jax.block_until_ready(y)
    y_ref = _reference(x, gamma, beta, SUB_BANDS)
    assert y.shape == x.shape and y.dtype == x.dtype
    assert jnp.allclose(y, y_ref, atol=1e-5, rtol=1e-5)

    # Second config with a deliberately tiny block budget to exercise the two-kernel
    # fallback path (stats reduction over L chunks + normalize).
    N2, C2, F2, T2 = 2, 4, 16, 32
    x2 = jax.random.normal(k_x2, (N2, C2, F2, T2), dtype=jnp.float32)
    y2 = sub_spectral_norm(x2, gamma, beta, sub_bands=SUB_BANDS,
                           block_budget_bytes=12_000)
    y2 = jax.block_until_ready(y2)
    y2_ref = _reference(x2, gamma, beta, SUB_BANDS)
    assert y2.shape == x2.shape and y2.dtype == x2.dtype
    assert jnp.allclose(y2, y2_ref, atol=5e-5, rtol=1e-5)

    print("KERNEL_OK")
</pallas_src>

<mosaic_0001>
module attributes {stable_mosaic.version = 11 : i64} {
  func.func @_ssn_fused_kernel(%arg0: i32, %arg1: memref<2x8x128xf32, #tpu.memory_space<vmem>>, %arg2: memref<1x8x1xf32, #tpu.memory_space<vmem>>, %arg3: memref<1x8x1xf32, #tpu.memory_space<vmem>>, %arg4: memref<2x8x128xf32, #tpu.memory_space<vmem>>) attributes {dimension_semantics = [#tpu.dimension_semantics<parallel>], iteration_bounds = array<i64: 1>, scalar_prefetch = 0 : i64, scratch_operands = 0 : i64, tpu.core_type = #tpu.core_type<tc>, window_params = [{transform_indices = @transform_0, window_bounds = array<i64: 2, 8, 128>}, {pipeline_mode = #tpu.pipeline_mode<synchronous>, transform_indices = @transform_1, window_bounds = array<i64: 1, 8, 1>}, {pipeline_mode = #tpu.pipeline_mode<synchronous>, transform_indices = @transform_2, window_bounds = array<i64: 1, 8, 1>}, {transform_indices = @transform_3, window_bounds = array<i64: 2, 8, 128>}]} {
    %c0 = arith.constant 0 : index
    %c0_0 = arith.constant 0 : index
    %c0_1 = arith.constant 0 : index
    %0 = vector.load %arg1[%c0, %c0_0, %c0_1] : memref<2x8x128xf32, #tpu.memory_space<vmem>>, vector<2x8x128xf32>
    %cst = arith.constant dense<0.000000e+00> : vector<8xf32>
    %1 = vector.multi_reduction <add>, %0, %cst [0, 2] : vector<2x8x128xf32> to vector<8xf32>
    %2 = vector.shape_cast %1 : vector<8xf32> to vector<1x8x1xf32>
    %cst_2 = arith.constant 3.906250e-03 : f32
    %3 = vector.broadcast %cst_2 : f32 to vector<1x8x1xf32>
    %4 = arith.mulf %2, %3 : vector<1x8x1xf32>
    %c0_3 = arith.constant 0 : index
    %c0_4 = arith.constant 0 : index
    %c0_5 = arith.constant 0 : index
    %5 = vector.load %arg1[%c0_3, %c0_4, %c0_5] : memref<2x8x128xf32, #tpu.memory_space<vmem>>, vector<2x8x128xf32>
    %6 = vector.broadcast %4 : vector<1x8x1xf32> to vector<2x8x128xf32>
    %7 = arith.subf %5, %6 : vector<2x8x128xf32>
    %8 = arith.mulf %7, %7 : vector<2x8x128xf32>
    %cst_6 = arith.constant dense<0.000000e+00> : vector<8xf32>
    %9 = vector.multi_reduction <add>, %8, %cst_6 [0, 2] : vector<2x8x128xf32> to vector<8xf32>
    %10 = vector.shape_cast %9 : vector<8xf32> to vector<1x8x1xf32>
    %cst_7 = arith.constant 3.906250e-03 : f32
    %11 = vector.broadcast %cst_7 : f32 to vector<1x8x1xf32>
    %12 = arith.mulf %10, %11 : vector<1x8x1xf32>
    %cst_8 = arith.constant 9.99999974E-6 : f32
    %13 = vector.broadcast %cst_8 : f32 to vector<1x8x1xf32>
    %14 = arith.addf %12, %13 : vector<1x8x1xf32>
    %15 = math.rsqrt %14 : vector<1x8x1xf32>
    %c8_i32 = arith.constant 8 : i32
    %16 = arith.muli %arg0, %c8_i32 : i32
    %17 = tpu.assume_multiple %16, 8 : i32
    %c0_9 = arith.constant 0 : index
    %18 = arith.index_cast %17 : i32 to index
    %c0_10 = arith.constant 0 : index
    %19 = vector.load %arg2[%c0_9, %18, %c0_10] : memref<1x8x1xf32, #tpu.memory_space<vmem>>, vector<1x8x1xf32>
    %c0_11 = arith.constant 0 : index
    %20 = arith.index_cast %17 : i32 to index
    %c0_12 = arith.constant 0 : index
    %21 = vector.load %arg3[%c0_11, %20, %c0_12] : memref<1x8x1xf32, #tpu.memory_space<vmem>>, vector<1x8x1xf32>
    %22 = arith.mulf %19, %15 : vector<1x8x1xf32>
    %23 = arith.mulf %4, %22 : vector<1x8x1xf32>
    %24 = arith.subf %21, %23 : vector<1x8x1xf32>
    %c0_13 = arith.constant 0 : index
    %c0_14 = arith.constant 0 : index
    %c0_15 = arith.constant 0 : index
    %25 = vector.load %arg1[%c0_13, %c0_14, %c0_15] : memref<2x8x128xf32, #tpu.memory_space<vmem>>, vector<2x8x128xf32>
    %26 = vector.broadcast %22 : vector<1x8x1xf32> to vector<2x8x128xf32>
    %27 = arith.mulf %25, %26 : vector<2x8x128xf32>
    %28 = vector.broadcast %24 : vector<1x8x1xf32> to vector<2x8x128xf32>
    %29 = arith.addf %27, %28 : vector<2x8x128xf32>
    %c0_16 = arith.constant 0 : index
    %c0_17 = arith.constant 0 : index
    %c0_18 = arith.constant 0 : index
    %30 = vector.load %arg4[%c0_16, %c0_17, %c0_18] : memref<2x8x128xf32, #tpu.memory_space<vmem>>, vector<2x8x128xf32>
    tpu.vector_store %arg4[%c0_16, %c0_17, %c0_18], %29 {strides = array<i32>} : memref<2x8x128xf32, #tpu.memory_space<vmem>>, vector<2x8x128xf32>,
    return
  }
  func.func @transform_0(%arg0: i32) -> (i32, i32, i32) {
    %c0_i32 = arith.constant 0 : i32
    %c0_i32_0 = arith.constant 0 : i32
    %c0_i32_1 = arith.constant 0 : i32
    return %c0_i32, %arg0, %c0_i32_0 : i32, i32, i32
  }
  func.func @transform_1(%arg0: i32) -> (i32, i32, i32) {
    %c0_i32 = arith.constant 0 : i32
    %c0_i32_0 = arith.constant 0 : i32
    %c0_i32_1 = arith.constant 0 : i32
    %c0_i32_2 = arith.constant 0 : i32
    return %c0_i32, %c0_i32_0, %c0_i32_1 : i32, i32, i32
  }
  func.func @transform_2(%arg0: i32) -> (i32, i32, i32) {
    %c0_i32 = arith.constant 0 : i32
    %c0_i32_0 = arith.constant 0 : i32
    %c0_i32_1 = arith.constant 0 : i32
    %c0_i32_2 = arith.constant 0 : i32
    return %c0_i32, %c0_i32_0, %c0_i32_1 : i32, i32, i32
  }
  func.func @transform_3(%arg0: i32) -> (i32, i32, i32) {
    %c0_i32 = arith.constant 0 : i32
    %c0_i32_0 = arith.constant 0 : i32
    %c0_i32_1 = arith.constant 0 : i32
    return %c0_i32, %arg0, %c0_i32_0 : i32, i32, i32
  }
}

</mosaic_0001>

<bundles_post_ra>
// kernel: sub_spectral_norm.1
= control target key start
LH: loop header
LB: loop body
LE: loop exit
PB: predicated region body
PF: predicated region fallthrough
CT: control target
= control target key end

     0   :  { %v63_v10 = vmov 0   ;;  %s102_s0 = inlined_call_operand.vmem [shape: f32[2,8,128], index: 0, kind: input, shape index: {}]   ;;  %s103_s1 = inlined_call_operand.vmem [shape: f32[1,8,1], index: 1, kind: input, shape index: {}]   ;;  %s104_s2 = inlined_call_operand.vmem [shape: f32[1,8,1], index: 2, kind: input, shape index: {}]   ;;  %s105_s3 = inlined_call_operand.vmem [shape: f32[2,8,128], index: 3, kind: output, shape index: {}]  }
   0x1   :  { %v14_v0 = vld [vmem:[%s102_s0] sm:$0xff]  ;;  %v15_v1 = vld [vmem:[%s102_s0 + $0x8] sm:$0xff]  ;;  %59 = vset.pattern.permute.xlu1 %v63_v10  ;;  %60 = vset.pattern.permute.xlu0 %v63_v10 }
   0x2   :  { %v16_v2 = vadd.f32 %v15_v1, %v14_v0  ;;  %v32_v14 = vld [vmem:[%s103_s1] sm:$0xff] }
   0x3   :  { %v34_v17 = vld [vmem:[%s104_s2] sm:$0xff] }
   0x4   :  { %17 = vadd.xlane.f32.xlu0 %v16_v2 }
  0x91   :  { %v18_v3 = vpop.xlane.xlu0 %17 }
  0x92   :  { %v19_v4 = vmul.f32 0.00390625, %v18_v3 }
  0x94   :  { %v20_v5 = vsub.f32 %v14_v0, %v19_v4  ;;  %v21_v6 = vsub.f32 %v15_v1, %v19_v4 }
  0x96   :  { %v22_v7 = vmul.f32 %v20_v5, %v20_v5  ;;  %v23_v8 = vmul.f32 %v21_v6, %v21_v6 }
  0x98   :  { %v24_v9 = vadd.f32 %v23_v8, %v22_v7 }
  0x9a   :  { %25 = vadd.xlane.f32.xlu0 %v24_v9 }
 0x127   :  { %v26_v11 = vpop.xlane.xlu0 %25 }
 0x128   :  { %v27_v12 = vmul.f32 0.00390625, %v26_v11 }
 0x12a   :  { %v28_v13 = vadd.f32 1e-05, %v27_v12 }
 0x12c   :  { %61 = vrsqrt.f32 %v28_v13 }
 0x136   :  { %v62_v15 = vpop.eup %61 }
 0x137   :  { %v35_v16 = vmul.f32 %v62_v15, %v32_v14 }
 0x139   :  { %40 = vperm.xlu1 %59, %v35_v16   ;;  %v36_v18 = vmul.f32 %v35_v16, %v19_v4 }
 0x13b   :  { %v37_v19 = vsub.f32 %v34_v17, %v36_v18 }
 0x13d   :  { %47 = vperm.xlu1 %59, %v37_v19  }
 0x1b8   :  { %v41_v20 = vpop.permute.xlu1 %40 }
 0x1b9   :  { %v43_v21 = vmul.f32 %v41_v20, %v14_v0  ;;  %v44_v22 = vmul.f32 %v41_v20, %v15_v1 }
 0x1bc   :  { %v48_v23 = vpop.permute.xlu1 %47 }
 0x1bd   :  { %v50_v24 = vadd.f32 %v48_v23, %v43_v21  ;;  %v51_v25 = vadd.f32 %v48_v23, %v44_v22 }
 0x1bf   :  { %52 = vst [vmem:[%s105_s3] sm:$0xff] %v50_v24  ;;  %53 = vst [vmem:[%s105_s3 + $0x8] sm:$0xff] %v51_v25 }

</bundles_post_ra>
